<compile_context>
chip_gen: v6e
topology: v6e:2x2x1
jax: 0.10.0
libtpu: 0.0.40
codegen_flags: <defaults>
</compile_context>

<pallas_src>
import numpy as np
import jax
import jax.numpy as jnp
from jax.experimental import pallas as pl
from jax.experimental.pallas import tpu as pltpu


def _round_up(n, m):
    return ((n + m - 1) // m) * m


def _default_vmem_limit_bytes():
    # ~3/4 of physical VMEM: ~48 MiB on v7x (64 MiB), ~96 MiB on v5e/v6e (128 MiB).
    try:
        cap = int(pltpu.get_tpu_info().vmem_capacity_bytes)
    except Exception:
        cap = 64 * 1024 * 1024          # conservative fallback (v7x physical VMEM)
    return (cap // 4) * 3


def _make_fourier_mlp_kernel(matmul_dtype, approx_recip):
    """Kernel factory: static dtype / reciprocal-mode baked in via closure."""

    def kernel(x_ref, kron_ref, off_ref, w1_ref, b1_ref, w2_ref, b2_ref, o_ref):
        # Fourier phases on the (otherwise idle) MXU, kept in f32:
        #   phase2[b, i*e8+j] = phase2[b, d + i*e8+j] = x[b, i] * 2*pi*f[j]
        # kron_ref is the frozen kron(I_in_dim, 2*pi*f) matrix duplicated along
        # lanes, so x stays (tb, in_dim) in HBM (no e8x-inflated input read).
        phase2 = jnp.dot(x_ref[...].astype(jnp.float32), kron_ref[...],
                         preferred_element_type=jnp.float32)          # (tb, 2d)

        # sin(x + pi/2) == cos(x): one lane-contiguous [cos | sin] feature tile,
        # no in-kernel concatenate, one fused Linear-1 matmul below.
        feat = jnp.sin(phase2 + off_ref[...]).astype(matmul_dtype)    # (tb, 2d)

        # Linear 1 (fused cos/sin weights; hidden width padded to 128 lanes,
        # padded columns and bias entries are zero).
        h = jnp.dot(feat, w1_ref[...], preferred_element_type=jnp.float32)
        h = h + b1_ref[...]                                           # (tb, emb_pad)

        # Mish with a single exp: mish(h) = h*(t^2+2t)/(t^2+2t+2), t = e^h.
        # Clamp at 20: ratio == 1 to f32 precision there, and exp cannot
        # overflow -> no inf/inf NaNs.  Mish(0) == 0, so padded lanes stay 0.
        t = jnp.exp(jnp.minimum(h, 20.0))
        num = t * (t + 2.0)
        den = num + 2.0                                               # den >= 2
        if approx_recip:
            ratio = num * pl.reciprocal(den, approx=True)
        else:
            ratio = num / den
        h = h * ratio

        # Linear 2 (padded hidden rows of w2 are zero -> inert; output padded
        # to a multiple of 128 lanes -> unmasked lane-dense store).
        out = jnp.dot(h.astype(matmul_dtype), w2_ref[...],
                      preferred_element_type=jnp.float32) + b2_ref[...]
        o_ref[...] = out.astype(o_ref.dtype)

    return kernel


def prepare_fourier_mlp_params(freqs, w1, b1, w2, b2, in_dim,
                               matmul_dtype=jnp.bfloat16):
    """One-time parameter packing (run at init / checkpoint-load time, NOT per call).

    freqs: (emb_dim//8,)                 frozen Fourier frequencies.
    w1:    (emb_dim//4*in_dim, emb_dim)  Linear 1, (in_features, out_features) layout,
                                         in PyTorch's per-input-dim cos/sin interleave.
    w2:    (emb_dim, emb_dim)            Linear 2, (in_features, out_features) layout.
    """
    freqs = jnp.asarray(freqs, jnp.float32)
    e8 = int(freqs.shape[0])
    e4 = 2 * e8
    d = in_dim * e8                      # number of distinct Fourier phases
    f_in = 2 * d                         # Fourier feature width
    emb_dim = int(w2.shape[0])
    assert w1.shape == (f_in, emb_dim)
    assert b1.shape == (emb_dim,) and b2.shape == (emb_dim,)
    assert w2.shape == (emb_dim, emb_dim)

    emb_pad = _round_up(emb_dim, 128)    # hidden width (VPU/EUP/MXU lane density)
    out_pad = _round_up(emb_dim, 128)    # output width (unmasked lane-dense vst)

    # kron(I_in_dim, 2*pi*f) duplicated along lanes -> (in_dim, 2d); one tiny
    # MXU matmul in the kernel produces both cos- and sin-phase halves at once.
    f2p = (2.0 * np.pi * np.asarray(freqs, dtype=np.float64)).astype(np.float32)
    kron = np.zeros((in_dim, d), np.float32)
    for i in range(in_dim):
        kron[i, i * e8:(i + 1) * e8] = f2p
    kron2 = jnp.asarray(np.concatenate([kron, kron], axis=1))         # (in_dim, 2d)

    # +pi/2 on the first half turns sin() into cos(): feat = [cos | sin].
    off = np.concatenate([np.full((d,), np.pi / 2, np.float32),
                          np.zeros((d,), np.float32)]).reshape(1, 2 * d)
    off = jnp.asarray(off)

    # Fuse W1, undoing torch's per-input-dim interleave.  Kernel feature
    # column c -> torch input-feature row:
    #   c in [0, d):  cos of phase (i, j) -> torch row i*e4 + j
    #   c in [d, 2d): sin of phase (i, j) -> torch row i*e4 + e8 + j
    rows = np.arange(d)
    i_idx, j_idx = np.divmod(rows, e8)
    cos_rows = i_idx * e4 + j_idx
    sin_rows = cos_rows + e8
    perm = jnp.asarray(np.concatenate([cos_rows, sin_rows]), jnp.int32)

    w1_perm = jnp.asarray(w1, jnp.float32)[perm]                      # (2d, emb_dim)
    w1p = jnp.zeros((2 * d, emb_pad), matmul_dtype).at[:, :emb_dim].set(
        w1_perm.astype(matmul_dtype))
    b1p = jnp.zeros((1, emb_pad), jnp.float32).at[0, :emb_dim].set(
        jnp.asarray(b1, jnp.float32))
    w2p = jnp.zeros((emb_pad, out_pad), matmul_dtype).at[:emb_dim, :emb_dim].set(
        jnp.asarray(w2, jnp.float32).astype(matmul_dtype))
    b2p = jnp.zeros((1, out_pad), jnp.float32).at[0, :emb_dim].set(
        jnp.asarray(b2, jnp.float32))

    arrays = dict(kron2=kron2, off=off, w1=w1p, b1=b1p, w2=w2p, b2=b2p)
    static = dict(in_dim=int(in_dim), d=int(d), emb_dim=emb_dim,
                  emb_pad=int(emb_pad), out_pad=int(out_pad),
                  matmul_dtype=jnp.dtype(matmul_dtype))
    return arrays, static


def batch_fourier_embedding(x, params, static, *, tb=1024, out_dtype=None):
    """Forward pass.  `params`/`static` come from prepare_fourier_mlp_params."""
    B, in_dim = x.shape
    assert in_dim == static["in_dim"]
    d = static["d"]
    emb_dim = static["emb_dim"]
    emb_pad = static["emb_pad"]
    out_pad = static["out_pad"]
    matmul_dtype = static["matmul_dtype"]
    out_dtype = x.dtype if out_dtype is None else out_dtype

    # Batch tile: as large as VMEM allows (amortizes ~0.35us/grid-step), a
    # multiple of 8 sublanes, and >= 2 grid steps whenever B allows so that
    # v7x's two TensorCores both get work ("parallel" grid axis).
    tb = min(int(tb), B)
    if B >= 16:
        tb = min(tb, _round_up((B + 1) // 2, 8))
    if tb < B:
        tb = max(8, (tb // 8) * 8)
    grid = (pl.cdiv(B, tb),)

    approx_recip = matmul_dtype != jnp.dtype(jnp.float32)
    kernel = _make_fourier_mlp_kernel(matmul_dtype, approx_recip)

    # TODO(synk): grid-invariant weight operands could be single-buffered via
    # pipeline_mode=pl.Buffered(1) to halve their VMEM footprint on v7x; left
    # double-buffered here for maximum lowering compatibility.
    out = pl.pallas_call(
        kernel,
        out_shape=jax.ShapeDtypeStruct((B, out_pad), out_dtype),
        grid_spec=pltpu.PrefetchScalarGridSpec(
            num_scalar_prefetch=0,
            grid=grid,
            in_specs=[
                pl.BlockSpec((tb, in_dim), lambda i: (i, 0)),         # x (un-expanded)
                pl.BlockSpec((in_dim, 2 * d), lambda i: (0, 0)),      # kron(I, 2*pi*f) x2
                pl.BlockSpec((1, 2 * d), lambda i: (0, 0)),           # [pi/2 | 0] offset
                pl.BlockSpec((2 * d, emb_pad), lambda i: (0, 0)),     # fused W1 (padded)
                pl.BlockSpec((1, emb_pad), lambda i: (0, 0)),         # b1 (padded)
                pl.BlockSpec((emb_pad, out_pad), lambda i: (0, 0)),   # W2 (padded)
                pl.BlockSpec((1, out_pad), lambda i: (0, 0)),         # b2 (padded)
            ],
            out_specs=pl.BlockSpec((tb, out_pad), lambda i: (i, 0)),
        ),
        compiler_params=pltpu.CompilerParams(
            dimension_semantics=("parallel",),
            vmem_limit_bytes=_default_vmem_limit_bytes(),
        ),
    )(x, params["kron2"], params["off"], params["w1"], params["b1"],
      params["w2"], params["b2"])

    if out_pad != emb_dim:
        out = out[:, :emb_dim]
    return out


def reference(x, freqs, w1, b1, w2, b2):
    """Pure-JAX transcription of the PyTorch forward (weights in (in, out) layout)."""
    emb = jnp.einsum('bi,j->bij', x, 2.0 * np.pi * freqs)
    emb = jnp.concatenate([jnp.cos(emb), jnp.sin(emb)], -1).reshape(x.shape[0], -1)
    h = emb @ w1 + b1
    sp = jnp.log1p(jnp.exp(-jnp.abs(h))) + jnp.maximum(h, 0.0)   # stable softplus
    h = h * jnp.tanh(sp)                                         # Mish
    return h @ w2 + b2


if __name__ == "__main__":
    in_dim = 4
    emb_dim = 32
    scale = 16.0
    B = 16

    e8 = emb_dim // 8
    f_in = (emb_dim // 4) * in_dim

    key = jax.random.PRNGKey(0)
    k_f, k_w1, k_b1, k_w2, k_b2, k_x = jax.random.split(key, 6)

    # Deterministic parameter init (shapes match the nn.Module).
    freqs = jax.random.normal(k_f, (e8,), dtype=jnp.float32) * scale
    w1 = jax.random.normal(k_w1, (f_in, emb_dim), dtype=jnp.float32) * (1.0 / np.sqrt(f_in))
    b1 = jax.random.normal(k_b1, (emb_dim,), dtype=jnp.float32) * 0.01
    w2 = jax.random.normal(k_w2, (emb_dim, emb_dim), dtype=jnp.float32) * (1.0 / np.sqrt(emb_dim))
    b2 = jax.random.normal(k_b2, (emb_dim,), dtype=jnp.float32) * 0.01

    x = jax.random.normal(k_x, (B, in_dim), dtype=jnp.float32)

    ref = reference(x, freqs, w1, b1, w2, b2)

    # Exact-semantics path: f32 matmuls, exact reciprocal.
    p32, s32 = prepare_fourier_mlp_params(freqs, w1, b1, w2, b2, in_dim,
                                          matmul_dtype=jnp.float32)
    out_f32 = jax.block_until_ready(batch_fourier_embedding(x, p32, s32))
    np.testing.assert_allclose(np.asarray(out_f32), np.asarray(ref),
                               rtol=2e-4, atol=2e-4)

    # Fast path: bf16 MXU matmuls (f32 accumulation), approx reciprocal in Mish.
    pbf, sbf = prepare_fourier_mlp_params(freqs, w1, b1, w2, b2, in_dim,
                                          matmul_dtype=jnp.bfloat16)
    out_bf16 = jax.block_until_ready(batch_fourier_embedding(x, pbf, sbf))
    np.testing.assert_allclose(np.asarray(out_bf16), np.asarray(ref),
                               rtol=5e-2, atol=5e-2)

    print("KERNEL_OK")
</pallas_src>

<mosaic_0001>
module attributes {stable_mosaic.version = 11 : i64} {
  func.func @kernel(%arg0: i32, %arg1: memref<8x4xf32, #tpu.memory_space<vmem>>, %arg2: memref<4x32xf32, #tpu.memory_space<vmem>>, %arg3: memref<1x32xf32, #tpu.memory_space<vmem>>, %arg4: memref<32x128xf32, #tpu.memory_space<vmem>>, %arg5: memref<1x128xf32, #tpu.memory_space<vmem>>, %arg6: memref<128x128xf32, #tpu.memory_space<vmem>>, %arg7: memref<1x128xf32, #tpu.memory_space<vmem>>, %arg8: memref<8x128xf32, #tpu.memory_space<vmem>>) attributes {dimension_semantics = [#tpu.dimension_semantics<parallel>], iteration_bounds = array<i64: 2>, scalar_prefetch = 0 : i64, scratch_operands = 0 : i64, tpu.core_type = #tpu.core_type<tc>, window_params = [{transform_indices = @transform_0, window_bounds = array<i64: 8, 4>}, {pipeline_mode = #tpu.pipeline_mode<synchronous>, transform_indices = @transform_1, window_bounds = array<i64: 4, 32>}, {pipeline_mode = #tpu.pipeline_mode<synchronous>, transform_indices = @transform_2, window_bounds = array<i64: 1, 32>}, {pipeline_mode = #tpu.pipeline_mode<synchronous>, transform_indices = @transform_3, window_bounds = array<i64: 32, 128>}, {pipeline_mode = #tpu.pipeline_mode<synchronous>, transform_indices = @transform_4, window_bounds = array<i64: 1, 128>}, {pipeline_mode = #tpu.pipeline_mode<synchronous>, transform_indices = @transform_5, window_bounds = array<i64: 128, 128>}, {pipeline_mode = #tpu.pipeline_mode<synchronous>, transform_indices = @transform_6, window_bounds = array<i64: 1, 128>}, {transform_indices = @transform_7, window_bounds = array<i64: 8, 128>}]} {
    %c0 = arith.constant 0 : index
    %c0_0 = arith.constant 0 : index
    %0 = vector.load %arg1[%c0, %c0_0] : memref<8x4xf32, #tpu.memory_space<vmem>>, vector<8x4xf32>
    %c0_1 = arith.constant 0 : index
    %c0_2 = arith.constant 0 : index
    %1 = vector.load %arg2[%c0_1, %c0_2] : memref<4x32xf32, #tpu.memory_space<vmem>>, vector<4x32xf32>
    %cst = arith.constant dense<0.000000e+00> : vector<8x32xf32>
    %2 = tpu.matmul %0, %1, %cst {dimension_numbers = #tpu.dot_dimension_numbers<[1], [0], [0], [1], [0, 0, 1, 1], [], []>} : vector<8x4xf32>, vector<4x32xf32>, vector<8x32xf32> -> vector<8x32xf32>
    %c0_3 = arith.constant 0 : index
    %c0_4 = arith.constant 0 : index
    %3 = vector.load %arg3[%c0_3, %c0_4] : memref<1x32xf32, #tpu.memory_space<vmem>>, vector<1x32xf32>
    %4 = vector.broadcast %3 : vector<1x32xf32> to vector<8x32xf32>
    %5 = arith.addf %2, %4 : vector<8x32xf32>
    %6 = math.sin %5 : vector<8x32xf32>
    %c0_5 = arith.constant 0 : index
    %c0_6 = arith.constant 0 : index
    %7 = vector.load %arg4[%c0_5, %c0_6] : memref<32x128xf32, #tpu.memory_space<vmem>>, vector<32x128xf32>
    %cst_7 = arith.constant dense<0.000000e+00> : vector<8x128xf32>
    %8 = tpu.matmul %6, %7, %cst_7 {dimension_numbers = #tpu.dot_dimension_numbers<[1], [0], [0], [1], [0, 0, 1, 1], [], []>} : vector<8x32xf32>, vector<32x128xf32>, vector<8x128xf32> -> vector<8x128xf32>
    %c0_8 = arith.constant 0 : index
    %c0_9 = arith.constant 0 : index
    %9 = vector.load %arg5[%c0_8, %c0_9] : memref<1x128xf32, #tpu.memory_space<vmem>>, vector<1x128xf32>
    %10 = vector.broadcast %9 : vector<1x128xf32> to vector<8x128xf32>
    %11 = arith.addf %8, %10 : vector<8x128xf32>
    %cst_10 = arith.constant 2.000000e+01 : f32
    %12 = vector.broadcast %cst_10 : f32 to vector<8x128xf32>
    %13 = arith.minimumf %11, %12 : vector<8x128xf32>
    %14 = math.exp %13 : vector<8x128xf32>
    %cst_11 = arith.constant 2.000000e+00 : f32
    %15 = vector.broadcast %cst_11 : f32 to vector<8x128xf32>
    %16 = arith.addf %14, %15 : vector<8x128xf32>
    %17 = arith.mulf %14, %16 : vector<8x128xf32>
    %cst_12 = arith.constant 2.000000e+00 : f32
    %18 = vector.broadcast %cst_12 : f32 to vector<8x128xf32>
    %19 = arith.addf %17, %18 : vector<8x128xf32>
    %20 = arith.divf %17, %19 : vector<8x128xf32>
    %21 = arith.mulf %11, %20 : vector<8x128xf32>
    %c0_13 = arith.constant 0 : index
    %c0_14 = arith.constant 0 : index
    %22 = vector.load %arg6[%c0_13, %c0_14] : memref<128x128xf32, #tpu.memory_space<vmem>>, vector<128x128xf32>
    %cst_15 = arith.constant dense<0.000000e+00> : vector<8x128xf32>
    %23 = tpu.matmul %21, %22, %cst_15 {dimension_numbers = #tpu.dot_dimension_numbers<[1], [0], [0], [1], [0, 0, 1, 1], [], []>} : vector<8x128xf32>, vector<128x128xf32>, vector<8x128xf32> -> vector<8x128xf32>
    %c0_16 = arith.constant 0 : index
    %c0_17 = arith.constant 0 : index
    %24 = vector.load %arg7[%c0_16, %c0_17] : memref<1x128xf32, #tpu.memory_space<vmem>>, vector<1x128xf32>
    %25 = vector.broadcast %24 : vector<1x128xf32> to vector<8x128xf32>
    %26 = arith.addf %23, %25 : vector<8x128xf32>
    %c0_18 = arith.constant 0 : index
    %c0_19 = arith.constant 0 : index
    %27 = vector.load %arg8[%c0_18, %c0_19] : memref<8x128xf32, #tpu.memory_space<vmem>>, vector<8x128xf32>
    tpu.vector_store %arg8[%c0_18, %c0_19], %26 {strides = array<i32>} : memref<8x128xf32, #tpu.memory_space<vmem>>, vector<8x128xf32>,
    return
  }
  func.func @transform_0(%arg0: i32) -> (i32, i32) {
    %c0_i32 = arith.constant 0 : i32
    %c0_i32_0 = arith.constant 0 : i32
    return %arg0, %c0_i32 : i32, i32
  }
  func.func @transform_1(%arg0: i32) -> (i32, i32) {
    %c0_i32 = arith.constant 0 : i32
    %c0_i32_0 = arith.constant 0 : i32
    %c0_i32_1 = arith.constant 0 : i32
    return %c0_i32, %c0_i32_0 : i32, i32
  }
  func.func @transform_2(%arg0: i32) -> (i32, i32) {
    %c0_i32 = arith.constant 0 : i32
    %c0_i32_0 = arith.constant 0 : i32
    %c0_i32_1 = arith.constant 0 : i32
    return %c0_i32, %c0_i32_0 : i32, i32
  }
  func.func @transform_3(%arg0: i32) -> (i32, i32) {
    %c0_i32 = arith.constant 0 : i32
    %c0_i32_0 = arith.constant 0 : i32
    %c0_i32_1 = arith.constant 0 : i32
    return %c0_i32, %c0_i32_0 : i32, i32
  }
  func.func @transform_4(%arg0: i32) -> (i32, i32) {
    %c0_i32 = arith.constant 0 : i32
    %c0_i32_0 = arith.constant 0 : i32
    %c0_i32_1 = arith.constant 0 : i32
    return %c0_i32, %c0_i32_0 : i32, i32
  }
  func.func @transform_5(%arg0: i32) -> (i32, i32) {
    %c0_i32 = arith.constant 0 : i32
    %c0_i32_0 = arith.constant 0 : i32
    %c0_i32_1 = arith.constant 0 : i32
    return %c0_i32, %c0_i32_0 : i32, i32
  }
  func.func @transform_6(%arg0: i32) -> (i32, i32) {
    %c0_i32 = arith.constant 0 : i32
    %c0_i32_0 = arith.constant 0 : i32
    %c0_i32_1 = arith.constant 0 : i32
    return %c0_i32, %c0_i32_0 : i32, i32
  }
  func.func @transform_7(%arg0: i32) -> (i32, i32) {
    %c0_i32 = arith.constant 0 : i32
    %c0_i32_0 = arith.constant 0 : i32
    return %arg0, %c0_i32 : i32, i32
  }
}

</mosaic_0001>

<bundles_post_ra>
// kernel: tpu_custom_call.1
= control target key start
LH: loop header
LB: loop body
LE: loop exit
PB: predicated region body
PF: predicated region fallthrough
CT: control target
= control target key end

     0   :  { %12 = vsyncpa [#allocation3], 0  ;;  %s1325_s0 = inlined_call_operand.vmem [shape: f32[16,4], index: 0, kind: input, shape index: {}]   ;;  %s1326_s1 = inlined_call_operand.vmem [shape: f32[4,32], index: 1, kind: input, shape index: {}]   ;;  %s1327_s2 = inlined_call_operand.vmem [shape: f32[1,32], index: 2, kind: input, shape index: {}]   ;;  %s1328_s3 = inlined_call_operand.hbm [shape: f32[32,128], index: 3, kind: input, shape index: {}]   ;;  %s1329_s4 = inlined_call_operand.vmem [shape: f32[1,128], index: 4, kind: input, shape index: {}]   ;;  %s1330_s5 = inlined_call_operand.hbm [shape: f32[128,128], index: 5, kind: input, shape index: {}]   ;;  %s1331_s6 = inlined_call_operand.vmem [shape: f32[1,128], index: 6, kind: input, shape index: {}]   ;;  %s1332_s7 = inlined_call_operand.hbm [shape: f32[16,128], index: 7, kind: output, shape index: {}]  }
   0x1   :  { %13 = vsyncpa [#allocation6], 0 }
   0x2   :  { %14 = vsyncpa [#allocation4], 0 }
   0x3   :  { %16 = vsyncpa [#allocation4 + $0x1], 0  ;;  %s1134_s24 = smov 0   ;;  %s1136_s25 = smov 0  }
   0x4   :  { %s1138_s26 = smov 0   ;;  %s1140_s27 = smov 0  }
   0x5 LB: > { %s1155_s28 = sadd.s32 4294967295, %s1079_s27   ;;  %s778_s29 = sadd.s32 4294967294, %s1079_s27   ;;  %s1079_s27 = sphi %s1140_s27, %s1346_s27   ;;  %s1075_s26 = sphi %s1138_s26, %s1345_s26   ;;  %s1071_s25 = sphi %s1136_s25, %s1344_s25   ;;  %s1067_s24 = sphi %s1134_s24, %s1343_s24  }
   0x6   : > { %s1159_s30 = sadd.s32 1, %s1079_s27   ;;  %s181_s8 = sadd.s32 1, %s1075_s26 }
   0x7   : > { %s178_s9 = ssub.s32 %s1079_s27, %s1159_s30  ;;  %p191_p0 = scmp.ne.s32.totalorder %s1075_s26, %s1071_s25 }
   0x8   : > { %p179_p1 = scmp.eq.s32.totalorder %s178_s9, 0  ;;  %p192_p2 = scmp.eq.s32.totalorder %s1155_s28, 1 }
   0x9   : > { %p197_p3 = scmp.ne.s32.totalorder %s1071_s25, %s1067_s24  ;;  %p198_p4 = scmp.eq.s32.totalorder %s778_s29, 1 }
   0xa   : > { %s1170_s10 = scalar_select %p179_p1, %s1075_s26, %s181_s8  }
   0xb   : > { %p1172_p5 = por %p192_p2, %p191_p0  ;;  %p1176_p6 = por %p198_p4, %p197_p3 }
   0xc   : > { %p779_p7 = scmp.ge.s32.totalorder %s1079_s27, 1  ;;  %p205_p8 = scmp.lt.s32.totalorder %s1079_s27, 3 }
   0xd   : > { %s1335_s12 = scalar_select %p1176_p6, 1, 0 }
   0xe   : > { %p1333_p9 = scmp.eq.s32.totalorder %s1155_s28, 0  ;;  %p1183_p10 = pnand %p779_p7, %p205_p8 }
   0xf   : > { %s1081_s14 = smov [#allocation2]   ;;  %s1082_s17 = smov [#allocation5]  }
  0x10   : > { %s223_s15 = sshll.u32 %s1081_s14, 4  ;;  %p891_p11 = pneg %p1183_p10  ;;  %s224_s15 = int_to_ptr.vmem [resolvable:$true] %s223_s15 }
  0x11   : > { %s239_s18 = sshll.u32 %s1082_s17, 4  ;;  %s970_s19 = scalar_lea.vmem %s224_s15, 512  ;;  %s240_s18 = int_to_ptr.vmem [resolvable:$true] %s239_s18 }
  0x12   : > { %p1191_p12 = pnand %p1333_p9, %p891_p11  ;;  %p971_p0 = scmp.ne.s32.totalorder %s224_s15, %s970_s19 }
  0x13   : > { %p978_p3 = scmp.lt.s32.totalorder %s224_s15, %s224_s15  ;;  %p979_p4 = scmp.lt.s32.totalorder %s970_s19, %s970_s19 }
  0x14   : > { %p961_p13 = pneg %p1191_p12 }
  0x15   : > { %p980_p7 = por %p979_p4, %p978_p3 }
  0x16   : > { %p973_p1 = pnand %p971_p0, %p961_p13 }
  0x18   : > { %p974_p2 = pneg %p973_p1 }
  0x1a   : > { %p981_p8 = pnand %p980_p7, %p974_p2 }
  0x1c   : > { %984 = shalt.err (!%p981_p8)
}
  0x1d   : > { %s1083_s20 = smov 128   ;;  %s1084_s21 = smov 8  }
  0x1e   : > { %894 = dma.hbm_to_vmem [thread:$0]  (!%p1191_p12), %s1328_s3, 512, %s224_s15, [#allocation3], %s1083_s20, %s1083_s20, %s1084_s21  }
  0x1f   : > { %s996_s29 = scalar_lea.vmem %s240_s18, 2048  ;;  %p1004_p9 = scmp.lt.s32.totalorder %s240_s18, %s240_s18 }
  0x20   : > { %p997_p11 = scmp.ne.s32.totalorder %s240_s18, %s996_s29  ;;  %p1005_p6 = scmp.lt.s32.totalorder %s996_s29, %s996_s29 }
  0x22   : > { %p999_p0 = pnand %p997_p11, %p961_p13  ;;  %p1006_p3 = por %p1005_p6, %p1004_p9 }
  0x24   : > { %p1000_p1 = pneg %p999_p0 }
  0x26   : > { %p1007_p2 = pnand %p1006_p3, %p1000_p1 }
  0x28   : > { %1010 = shalt.err (!%p1007_p2)
}
  0x29   : > { %897 = dma.hbm_to_vmem [thread:$0]  (!%p1191_p12), %s1330_s5, 2048, %s240_s18, [#allocation6], %s1083_s20, %s1083_s20, %s1084_s21  }
  0x2a   : > { %265 = sbr.rel (%p1183_p10) target bundleno = 780 (0x30c), region = 48  ;;  %p1338_p4 = scmp.eq.s32.totalorder (!%p1183_p10), %s1155_s28, 0 }
  0x2f   : > { %1054 = dma.done.wait (%p1338_p4), [#allocation3], 512   ;;  %p1339_p13 = pmov %p1338_p4 }
  0x30   : > { %p1340_p7 = pmov %p1338_p4 }
  0x31   : > { %1056 = vsyncadd (%p1339_p13), [#allocation3], 4294966784 }
  0x32   : > { %1058 = dma.done.wait (%p1340_p7), [#allocation6], 2048   ;;  %p1341_p6 = pmov %p1338_p4 }
  0x33   : > { %p300_p9 = scmp.lt.s32.totalorder %s1155_s28, 1  ;;  %v1085_v0 = vmov 0.0   ;;  %vm1086_vm0 = vmmov 0   ;;  %vm317_vm1 = vcmask 1043456   ;;  %vm313_vm2 = vcmask 31744   ;;  %v498_v3 = vld [vmem:[#allocation2 + $0x18] sm:$0xff] }
  0x34   : > { %1060 = vsyncadd (%p1341_p6), [#allocation6], 4294965248  ;;  %826 = vmatprep.subr.mxu1 %v1085_v0  ;;  %828 = vmatprep.mubr.msk.f32.mxu1 %vm1086_vm0, %v1085_v0  ;;  %v305_v1 = vld [vmem:[%s1326_s1] sm:$0xf]  ;;  %v497_v4 = vld [vmem:[#allocation2 + $0x10] sm:$0xff]  ;;  %vm506_vm15 = vcmask 261120  }
  0x35   : > { %s301_s13 = scalar_select %p300_p9, %s1155_s28, 1  ;;  %842 = vmatprep.subr.mxu0 %v1085_v0  ;;  %874 = vmatprep.mubr.msk.f32.mxu0 %vm1086_vm0, %v1085_v0  ;;  %v496_v5 = vld [vmem:[#allocation2 + $0x8] sm:$0xff]  ;;  %v495_v6 = vld [vmem:[#allocation2] sm:$0xff]  ;;  %v1087_v21 = vmov 683565275  }
  0x36   : > { %827 = vmatpush3.msk.msra.mxu1 %vm317_vm1, %v305_v1  ;;  %v788_v7 = vld [vmem:[%s1327_s2] ss:$0 sm:$0xff]  ;;  %v1088_v23 = vmov 2475754826   ;;  %v1089_v26 = vmov 2131351028  }
  0x37   : > { %s787_s14 = sshll.u32 %s301_s13, 3  ;;  %831 = vmatprep.subr.mxu1 %v1085_v0  ;;  %v1090_v29 = vmov 2102212464   ;;  %v1091_v32 = vmov 920167782   ;;  %s297_s29 = sand.u32 1, %s1071_s25  }
  0x38   : > { %s303_s17 = scalar_lea.vmem %s1325_s0, %s787_s14  ;;  %v1092_v35 = vmov 1326507024   ;;  %s786_s8 = sshll.u32 %s297_s29, 3 }
  0x39   : > { %v304_v2 = vld [vmem:[%s303_s17] sm:$0xff]  ;;  %s799_s14 = sshll.u32 %s1155_s28, 7  ;;  %s299_s15 = scalar_lea.vmem [#allocation7], %s786_s8 }
  0x3a   : > { %829 = vmatmul.mubr.msk.f32.vlgmr.msra.gmra.mxu1 %vm313_vm2, %v304_v2  ;;  %s697_s16 = sshll.u32 %s299_s15, 4  ;;  %s1290_s19 = scalar_lea.hbm %s1332_s7, %s799_s14  ;;  %s698_s16 = int_to_ptr.vmem [resolvable:$true] %s697_s16 }
  0x3b   : > { %839 = vmatprep.mubr.msk.f32.mxu1 %vm1086_vm0, %v1085_v0  ;;  %832 = vmatpush3.msra.mxu1 %v498_v3  ;;  %s684_s20 = scalar_lea.sflag [#allocation4], %s297_s29  ;;  %s1011_s21 = scalar_lea.vmem %s698_s16, 128 }
  0x3c   : > { %833 = vmatprep.subr.mxu1 %v1085_v0  ;;  %p1012_p10 = scmp.ne.s32.totalorder %s698_s16, %s1011_s21  ;;  %s1093_s22 = smov [#allocation7]  }
  0x3d   : > { %834 = vmatpush3.msra.mxu1 %v497_v4  ;;  %s1015_s28 = sshll.u32 %s1093_s22, 4  ;;  %s1016_s28 = int_to_ptr.vmem [resolvable:$false] %s1015_s28 }
  0x3e   : > { %835 = vmatprep.subr.mxu1 %v1085_v0  ;;  %p1013_p12 = pnand %p1012_p10, %p1172_p5  ;;  %s1017_s23 = scalar_lea.vmem %s1016_s28, 256 }
  0x3f   : > { %836 = vmatpush3.msra.mxu1 %v496_v5  ;;  %p1018_p11 = scmp.lt.s32.totalorder %s698_s16, %s1016_s28  ;;  %p1019_p0 = scmp.lt.s32.totalorder %s1017_s23, %s1011_s21 }
  0x40   : > { %837 = vmatprep.subr.mxu1 %v1085_v0  ;;  %p1014_p8 = pneg %p1013_p12 }
  0x41   : > { %838 = vmatpush3.msra.mxu1 %v495_v6  ;;  %p1020_p1 = por %p1019_p0, %p1018_p11 }
  0x43   : > { %p1021_p3 = pnand %p1020_p1, %p1014_p8 }
  0xfa   : > { %v387_v8 = vpop.f32.mrf.mxu1 }
  0xfb   : > { %v1243_v9 = vadd.f32 %v788_v7, %v387_v8 }
  0xfc   : > { %v830_v10 = vpop.f32.mrf.mxu1 }
  0xfd   : > { %v394_v11 = vand.u32 2139095040, %v1243_v9  ;;  %v391_v15 = vand.u32 2147483647, %v1243_v9  ;;  %vm393_vm10 = vcmp.lt.s32.totalorder %v1243_v9, 0  ;;  %vm483_vm0 = vweird.f32 %v1243_v9 }
  0xff   : > { %v395_v12 = vshrl.u32 %v394_v11, 23  ;;  %v398_v18 = vand.u32 8388607, %v391_v15  ;;  %vm392_vm11 = vcmp.le.f32.partialorder %v391_v15, 0.7853982 }
 0x101   : > { %v791_v13 = vadd.s32 4294967169, %v395_v12  ;;  %v399_v37 = vor.u32 8388608, %v398_v18 }
 0x103   : > { %v401_v14 = vadd.s32 1, %v791_v13  ;;  %v439_v51 = vshll.u32 %v399_v37, 8 }
 0x105   : > { %vm402_vm3 = vcmp.gt.s32.totalorder %v401_v14, 0 }
 0x106   : > { %v403_v16 = vsel %vm402_vm3, %v401_v14, 0 }
 0x107   : > { %v405_v17 = vand.u32 31, %v403_v16  ;;  %v404_v20 = vshrl.u32 %v403_v16, 5 }
 0x109   : > { %v406_v19 = vsub.s32 32, %v405_v17  ;;  %v408_v22 = vshll.u32 %v1087_v21, %v405_v17  ;;  %v411_v24 = vshll.u32 %v1088_v23, %v405_v17  ;;  %v414_v28 = vshll.u32 %v1089_v26, %v405_v17 }
 0x10a   : > { %v417_v31 = vshll.u32 %v1090_v29, %v405_v17  ;;  %v420_v34 = vshll.u32 %v1091_v32, %v405_v17  ;;  %vm423_vm4 = vcmp.lt.s32.totalorder %v404_v20, 1  ;;  %vm426_vm5 = vcmp.lt.s32.totalorder %v404_v20, 4 }
 0x10b   : > { %v409_v25 = vshrl.u32 %v1088_v23, %v406_v19  ;;  %v412_v27 = vshrl.u32 %v1089_v26, %v406_v19  ;;  %v415_v30 = vshrl.u32 %v1090_v29, %v406_v19  ;;  %v418_v33 = vshrl.u32 %v1091_v32, %v406_v19 }
 0x10c   : > { %v421_v36 = vshrl.u32 %v1092_v35, %v406_v19  ;;  %v407_v46 = vshrl.u32 %v1087_v21, %v406_v19  ;;  %vm425_vm6 = vcmp.lt.s32.totalorder %v404_v20, 3  ;;  %vm424_vm7 = vcmp.lt.s32.totalorder %v404_v20, 2 }
 0x10d   : > { %v410_v38 = vor.u32 %v409_v25, %v408_v22  ;;  %v413_v39 = vor.u32 %v412_v27, %v411_v24  ;;  %v416_v40 = vor.u32 %v415_v30, %v414_v28  ;;  %v419_v41 = vor.u32 %v418_v33, %v417_v31 }
 0x10e   : > { %v422_v42 = vor.u32 %v421_v36, %v420_v34 }
 0x10f   : > { %v428_v43 = vsel %vm426_vm5, %v416_v40, 2102212464  ;;  %v431_v44 = vsel %vm423_vm4, %v410_v38, %v413_v39  ;;  %v435_v45 = vsel %vm423_vm4, %v413_v39, %v416_v40  ;;  %v432_v47 = vsel %vm426_vm5, %v419_v41, 920167782 }
 0x110   : > { %v436_v48 = vsel %vm426_vm5, %v422_v42, 1326507024  ;;  %v433_v49 = vsel %vm425_vm6, %v416_v40, %v432_v47  ;;  %v427_v52 = vsel %vm423_vm4, %v407_v46, %v410_v38  ;;  %v429_v53 = vsel %vm425_vm6, %v413_v39, %v428_v43  ;;  %v604_v40 = vld [vmem:[#allocation5 + $0x78] sm:$0xff]  ;;  %v602_v42 = vld [vmem:[#allocation5 + $0x68] sm:$0xff]  ;;  %v601_v43 = vld [vmem:[#allocation5 + $0x60] sm:$0xff] }
 0x111   : > { %v437_v50 = vsel %vm425_vm6, %v419_v41, %v436_v48  ;;  %v434_v54 = vsel %vm424_vm7, %v431_v44, %v433_v49  ;;  %v430_v60 = vsel %vm424_vm7, %v427_v52, %v429_v53  ;;  %843 = vmatpush3.msra.mxu0 %v604_v40  ;;  %v603_v41 = vld [vmem:[#allocation5 + $0x70] sm:$0xff]  ;;  %v597_v46 = vld [vmem:[#allocation5 + $0x40] sm:$0xff]  ;;  %v596_v47 = vld [vmem:[#allocation5 + $0x38] sm:$0xff] }
 0x112   : > { %v438_v55 = vsel %vm424_vm7, %v435_v45, %v437_v50  ;;  %v1252_v58 = vmul.u32.u64.low %v439_v51, %v434_v54  ;;  %v1253_v59 = vmul.u32.u64.high %v439_v51, %v434_v54, %v1252_v58  ;;  %v446_v62 = vmul.u32 %v439_v51, %v430_v60  ;;  %844 = vmatprep.subr.mxu0 %v1085_v0  ;;  %v599_v44 = vld [vmem:[#allocation5 + $0x50] sm:$0xff]  ;;  %v598_v45 = vld [vmem:[#allocation5 + $0x48] sm:$0xff]  ;;  %v593_v50 = vld [vmem:[#allocation5 + $0x20] sm:$0xff] }
 0x113   : > { %v1249_v56 = vmul.u32.u64.low %v439_v51, %v438_v55  ;;  %v1250_v57 = vmul.u32.u64.high %v439_v51, %v438_v55, %v1249_v56  ;;  %845 = vmatpush3.msra.mxu0 %v603_v41  ;;  %v595_v48 = vld [vmem:[#allocation5 + $0x30] sm:$0xff]  ;;  %v594_v49 = vld [vmem:[#allocation5 + $0x28] sm:$0xff]  ;;  %v592_v51 = vld [vmem:[#allocation5 + $0x18] sm:$0xff] }
 0x114   : > { %v449_v61 = vadd.s32 1, %v1253_v59  ;;  %846 = vmatprep.subr.mxu0 %v1085_v0  ;;  %v591_v52 = vld [vmem:[#allocation5 + $0x10] sm:$0xff]  ;;  %v590_v53 = vld [vmem:[#allocation5 + $0x8] sm:$0xff]  ;;  %v589_v54 = vld [vmem:[#allocation5] sm:$0xff] }
 0x115   : > { %vm448_vm8 = vc.u32 %v1250_v57, %v1252_v58  ;;  %v447_v12 = vadd.s32 %v1252_v58, %v1250_v57  ;;  %847 = vmatpush3.msra.mxu0 %v602_v42  ;;  %v795_v55 = vld [vmem:[%s1329_s4] ss:$0 sm:$0xff] }
 0x116   : > { %v450_v63 = vsel %vm448_vm8, %v449_v61, %v1253_v59  ;;  %848 = vmatprep.subr.mxu0 %v1085_v0 }
 0x117   : > { %v451_v1 = vadd.s32 %v450_v63, %v446_v62  ;;  %849 = vmatpush3.msra.mxu0 %v601_v43 }
 0x118   : > { %850 = vmatprep.subr.mxu0 %v1085_v0 }
 0x119   : > { %v452_v2 = vadd.s32 536870912, %v451_v1 }
 0x11b   : > { %v453_v3 = vshrl.u32 %v452_v2, 30 }
 0x11d   : > { %v454_v4 = vshll.u32 %v453_v3, 30  ;;  %v477_v26 = vsub.s32 4, %v453_v3 }
 0x11f   : > { %v455_v5 = vsub.s32 %v451_v1, %v454_v4  ;;  %v478_v29 = vsel %vm393_vm10, %v477_v26, %v453_v3  ;;  %v797_v4 = vld [vmem:[%s1331_s6] ss:$0 sm:$0xff] }
 0x120   : > { %v480_v30 = vsel %vm392_vm11, 0, %v478_v29 }
 0x121   : > { %v457_v6 = vsub.s32 0, %v455_v5  ;;  %v484_v31 = vadd.s32 3, %v480_v30 }
 0x123   : > { %v792_v7 = vmin.u32 %v457_v6, %v455_v5  ;;  %v485_v32 = vand.u32 3, %v484_v31 }
 0x125   : > { %v459_v8 = vclz %v792_v7  ;;  %vm490_vm12 = vcmp.eq.s32.totalorder %v485_v32, 2  ;;  %vm487_vm13 = vcmp.eq.s32.totalorder %v485_v32, 0  ;;  %vm486_vm14 = vcmp.lt.s32.totalorder %v485_v32, 2 }
 0x127   : > { %v793_v10 = vadd.s32 4294967294, %v459_v8 }
 0x129   : > { %vm794_vm9 = vcmp.lt.s32.totalorder %v793_v10, 0 }
 0x12a   : > { %v462_v11 = vsel %vm794_vm9, 0, %v793_v10 }
 0x12b   : > { %v463_v13 = vsub.s32 32, %v462_v11  ;;  %v467_v14 = vsub.s32 4294967266, %v462_v11  ;;  %v464_v16 = vshll.u32 %v455_v5, %v462_v11 }
 0x12d   : > { %v465_v17 = vshrl.u32 %v447_v12, %v463_v13  ;;  %v468_v18 = vadd.s32 127, %v467_v14 }
 0x12f   : > { %v466_v19 = vor.u32 %v465_v17, %v464_v16  ;;  %v469_v20 = vshll.u32 %v468_v18, 23 }
 0x131   : > { %v470_v21 = vor.u32 4788187, %v469_v20  ;;  %v473_v23 = vcvt.s32.f32 %v466_v19 }
 0x133   : > { %v471_v22 = vand.u32 2147483647, %v470_v21 }
 0x135   : > { %v474_v24 = vmul.f32 %v473_v23, %v471_v22 }
 0x137   : > { %v475_v25 = vxor.u32 2147483648, %v474_v24 }
 0x139   : > { %v476_v27 = vsel %vm393_vm10, %v475_v25, %v474_v24 }
 0x13a   : > { %v479_v28 = vsel %vm392_vm11, %v1243_v9, %v476_v27  ;;  %v600_v9 = vld [vmem:[#allocation5 + $0x58] sm:$0xff] }
 0x13b   : > { %951 = vcosq.f32 %v479_v28  ;;  %851 = vmatpush3.msra.mxu0 %v600_v9 }
 0x13c   : > { %953 = vsinq.f32 %v479_v28  ;;  %852 = vmatprep.subr.mxu0 %v1085_v0 }
 0x13d   : > { %853 = vmatpush3.msra.mxu0 %v599_v44 }
 0x13e   : > { %854 = vmatprep.subr.mxu0 %v1085_v0 }
 0x13f   : > { %855 = vmatpush3.msra.mxu0 %v598_v45 }
 0x140   : > { %856 = vmatprep.subr.mxu0 %v1085_v0 }
 0x141   : > { %857 = vmatpush3.msra.mxu0 %v597_v46 }
 0x142   : > { %858 = vmatprep.subr.mxu0 %v1085_v0 }
 0x143   : > { %859 = vmatpush3.msra.mxu0 %v596_v47 }
 0x144   : > { %860 = vmatprep.subr.mxu0 %v1085_v0 }
 0x145   : > { %861 = vmatpush3.msra.mxu0 %v595_v48 }
 0x146   : > { %862 = vmatprep.subr.mxu0 %v1085_v0 }
 0x147   : > { %863 = vmatpush3.msra.mxu0 %v594_v49 }
 0x148   : > { %v952_v33 = vpop.eup %951  ;;  %864 = vmatprep.subr.mxu0 %v1085_v0 }
 0x149   : > { %v954_v34 = vpop.eup %953  ;;  %v491_v35 = vxor.u32 2147483648, %v952_v33  ;;  %865 = vmatpush3.msra.mxu0 %v593_v50 }
 0x14a   : > { %v488_v36 = vxor.u32 2147483648, %v954_v34  ;;  %866 = vmatprep.subr.mxu0 %v1085_v0 }
 0x14b   : > { %v492_v37 = vsel %vm490_vm12, %v491_v35, %v954_v34  ;;  %867 = vmatpush3.msra.mxu0 %v592_v51 }
 0x14c   : > { %v489_v38 = vsel %vm487_vm13, %v952_v33, %v488_v36  ;;  %868 = vmatprep.subr.mxu0 %v1085_v0 }
 0x14d   : > { %v493_v15 = vsel %vm486_vm14, %v489_v38, %v492_v37  ;;  %869 = vmatpush3.msra.mxu0 %v591_v52 }
 0x14e   : > { %v494_v39 = vsel %vm483_vm0, nan, %v493_v15  ;;  %870 = vmatprep.subr.mxu0 %v1085_v0 }
 0x14f   : > { %840 = vmatmul.mubr.msk.f32.vlgmr.msra.gmra.mxu1 %vm506_vm15, %v494_v39  ;;  %871 = vmatpush3.msra.mxu0 %v590_v53 }
 0x150   : > { %872 = vmatprep.subr.mxu0 %v1085_v0 }
 0x151   : > { %873 = vmatpush3.msra.mxu0 %v589_v54 }
 0x20f   : > { %v576_v56 = vpop.f32.mrf.mxu1 }
 0x210   : > { %v577_v57 = vadd.f32 %v795_v55, %v576_v56 }
 0x211   : > { %v841_v58 = vpop.f32.mrf.mxu1 }
 0x212   : > { %v580_v59 = vmin.f32 %v577_v57, 20.0 }
 0x214   : > { %v581_v60 = vmul.f32 1.442695, %v580_v59 }
 0x216   : > { %955 = vpow2.f32 %v581_v60 }
 0x223   : > { %v956_v61 = vpop.eup %955 }
 0x224   : > { %v583_v62 = vadd.f32 2.0, %v956_v61 }
 0x226   : > { %v584_v63 = vmul.f32 %v956_v61, %v583_v62 }
 0x228   : > { %v585_v1 = vadd.f32 2.0, %v584_v63 }
 0x22a   : > { %957 = vrcp.f32 %v585_v1 }
 0x237   : > { %v958_v2 = vpop.eup %957 }
 0x238   : > { %v587_v0 = vmul.f32 %v958_v2, %v584_v63 }
 0x23a   : > { %v588_v3 = vmul.f32 %v587_v0, %v577_v57 }
 0x23c   : > { %875 = vmatmul.mubr.f32.vlgmr.msra.gmra.mxu0 %v588_v3 }
 0x2fc   : > { %v678_v5 = vpop.f32.mrf.mxu0 }
 0x2fd   : > { %v679_v6 = vadd.f32 %v797_v4, %v678_v5 }
 0x2fe   : > { %v876_v7 = vpop.f32.mrf.mxu0 }
 0x2ff   : > { %682 = vst [vmem:[%s299_s15] sm:$0xff] %v679_v6 }
 0x300   : > { %1024 = shalt.err (!%p1021_p3)
}
 0x301   : > { %s1025_s8 = scalar_lea.hbm %s1290_s19, 128  ;;  %s1029_s13 = scalar_lea.hbm %s1332_s7, 256 }
 0x302   : > { %p1026_p2 = scmp.ne.s32.totalorder %s1290_s19, %s1025_s8  ;;  %p1030_p7 = scmp.lt.s32.totalorder %s1290_s19, %s1332_s7 }
 0x303   : > { %p1031_p6 = scmp.lt.s32.totalorder %s1029_s13, %s1025_s8 }
 0x304   : > { %p1027_p4 = pnand %p1026_p2, %p1172_p5 }
 0x305   : > { %p1032_p9 = por %p1031_p6, %p1030_p7 }
 0x306   : > { %p1028_p13 = pneg %p1027_p4 }
 0x308   : > { %p1033_p10 = pnand %p1032_p9, %p1028_p13 }
 0x30a   : > { %1036 = shalt.err (!%p1033_p10)
}
 0x30b   : > { %889 = dma.vmem_to_hbm [thread:$0]  (%p1172_p5), %s698_s16, 128, %s1290_s19, %s684_s20  }
 0x30c PF: > { %p906_p12 = scmp.ge.s32.totalorder %s1079_s27, 2  ;;  %s709_s17 = sand.u32 1, %s1067_s24  }
 0x30d   : > { %p1342_p8 = scmp.ne.s32.totalorder %s1335_s12, 0  ;;  %s710_s18 = scalar_lea.sflag [#allocation4], %s709_s17 }
 0x30f   : > { %p899_p11 = pnand %p906_p12, %p1342_p8 }
 0x311   : > { %p900_p0 = pneg %p899_p11 }
 0x313   : > { %1062 = dma.done.wait (%p900_p0), %s710_s18, 128  }
 0x314   : > { %1064 = vsyncadd (%p900_p0), %s710_s18, 4294967168  ;;  %p19_p1 = scmp.ge.s32.totalorder %s1159_s30, 4   ;;  %s1343_s24 = smov %s1071_s25 }
 0x315   : > { %s1344_s25 = smov %s1075_s26  ;;  %s1345_s26 = smov %s1170_s10 }
 0x316   : > { %s1346_s27 = smov %s1159_s30  ;;  %21 = sbr.rel (!%p19_p1) target bundleno = 5 (0x5), region = 92 }
 0x31b   :  { %715 = vsyncpa [#allocation3], 1 }
 0x31c   :  { %717 = vsyncpa [#allocation3 + $0x1], 1 }
 0x31d   :  { %718 = vsyncpa [#allocation6], 1 }
 0x31e   :  { %719 = vsyncpa [#allocation4], 1 }
 0x31f   :  { %721 = vsyncpa [#allocation4 + $0x1], 1 }

</bundles_post_ra>
